<compile_context>
chip_gen: v6e
topology: v6e:2x2x1
jax: 0.10.0
libtpu: 0.0.40
codegen_flags: <defaults>
</compile_context>

<pallas_src>
import functools
import math

import jax
import jax.numpy as jnp
from jax import lax
from jax.experimental import pallas as pl
from jax.experimental.pallas import tpu as pltpu


def _sdpa_kernel(q_ref, k_ref, v_ref, mask_ref, out_ref, attn_ref=None, *,
                 scale, compute_dtype):
    # Blocks:
    #   q_ref    : (1, Hb, TQ, d_k)
    #   k_ref    : (1, Hb, L,  d_k)
    #   v_ref    : (1, Hb, L,  d_v)
    #   mask_ref : (1, 1, MQ, L)   with MQ in {1, TQ}
    #   out_ref  : (1, Hb, TQ, d_v)
    #   attn_ref : (1, Hb, TQ, L)  (optional)
    mm_precision = (lax.Precision.HIGHEST
                    if jnp.dtype(compute_dtype) == jnp.float32
                    else lax.Precision.DEFAULT)

    # Fold 1/sqrt(d_k) into q: hb*tq*d_k multiplies instead of hb*tq*L.
    q = (q_ref[0].astype(jnp.float32) * scale).astype(compute_dtype)
    k = k_ref[0].astype(compute_dtype)
    v = v_ref[0].astype(compute_dtype)

    # scores = (q/sqrt(d_k)) @ k^T: contract d_k of both operands with a head
    # batch dim -- no explicit transpose, K feeds the MXU directly; f32 acc.
    scores = lax.dot_general(
        q, k, dimension_numbers=(((2,), (2,)), ((0,), (0,))),
        precision=mm_precision, preferred_element_type=jnp.float32)

    # masked_fill(mask == 0, -1e9); broadcasts over heads (and query rows
    # when MQ == 1).
    m = mask_ref[0, 0]                                    # (MQ, L)
    scores = jnp.where((m == 0)[None, :, :], jnp.float32(-1e9), scores)

    # Numerically stable row-wise softmax; all elementwise math in f32 and an
    # exact divide so p_attn matches F.softmax (rows sum to 1).
    mx = jnp.max(scores, axis=-1, keepdims=True)
    e = jnp.exp(scores - mx)
    p = e / jnp.sum(e, axis=-1, keepdims=True)

    if attn_ref is not None:
        attn_ref[0] = p.astype(attn_ref.dtype)

    out = lax.dot_general(
        p.astype(compute_dtype), v,
        dimension_numbers=(((2,), (1,)), ((0,), (0,))),
        precision=mm_precision, preferred_element_type=jnp.float32)
    out_ref[0] = out.astype(out_ref.dtype)


def _divisors_desc(n, cap):
    cap = max(1, min(cap, n))
    return [d for d in range(cap, 0, -1) if n % d == 0]


def _vmem_budget(override=None):
    cap = 64 * 1024 * 1024                     # conservative fallback (v7x/TC)
    try:
        cap = int(pltpu.get_tpu_info().vmem_capacity_bytes)
    except Exception:
        pass
    limit = max(16 * 1024 * 1024, int(cap * 0.75))   # scoped limit for compiler
    budget = int(cap * 0.55) if override is None else int(override)
    return min(budget, limit), limit, cap


def _vmem_bytes(hb, tq, mq, L, d_k, d_v, in_isz, out_isz, attn_isz, cmp_isz,
                kv_buffers, write_attn):
    # Auto-pipelined I/O tiles (double-buffered; K/V optionally single).
    io = 2 * hb * tq * d_k * in_isz                       # q
    io += kv_buffers * hb * L * (d_k + d_v) * in_isz      # k, v
    io += 2 * mq * L * 4                                  # mask (int32)
    io += 2 * hb * tq * d_v * out_isz                     # out
    if write_attn:
        io += 2 * hb * tq * L * attn_isz                  # p_attn
    # In-body live temporaries: compute-dtype copies of q/k/v and p, the f32
    # scores / exp / probabilities (co-live), and the f32 out tile.
    live = hb * (tq * d_k + L * d_k + L * d_v) * cmp_isz
    live += 3 * hb * tq * L * 4
    live += hb * tq * L * cmp_isz
    live += hb * tq * d_v * 4
    return io + live


def _pick_tiles(H, L, d_k, d_v, per_row_mask, in_dtype, out_dtype, attn_dtype,
                compute_dtype, write_attn, budget_bytes, hb_cap, tq_cap):
    in_isz = jnp.dtype(in_dtype).itemsize
    out_isz = jnp.dtype(out_dtype).itemsize
    attn_isz = jnp.dtype(attn_dtype).itemsize
    cmp_isz = jnp.dtype(compute_dtype).itemsize

    tq_cands = ([d for d in _divisors_desc(L, tq_cap) if d == L or d % 8 == 0]
                or [L])
    hb_cands = _divisors_desc(H, hb_cap)

    def fits(hb, tq, kv_buffers):
        mq = tq if per_row_mask else 1
        return _vmem_bytes(hb, tq, mq, L, d_k, d_v, in_isz, out_isz, attn_isz,
                           cmp_isz, kv_buffers, write_attn) <= budget_bytes

    hi, ti, kv_buffers = 0, 0, 2
    while not fits(hb_cands[hi], tq_cands[ti], kv_buffers):
        if hi + 1 < len(hb_cands):
            hi += 1              # shed heads-per-step first (more parallel
                                 # grid steps for v7x's two TensorCores)
        elif kv_buffers == 2:
            kv_buffers = 1       # then single-buffer the q-invariant K/V
        elif ti + 1 < len(tq_cands):
            ti += 1              # then shrink the query tile
        else:
            # TODO(synk): flash-style KV grid axis (online softmax) for very
            # long L on v7x's 64 MiB VMEM; this fallback may spill.
            break
    return hb_cands[hi], tq_cands[ti], kv_buffers


def scaled_dot_product_attention(query, key, value, mask=None, *,
                                 compute_dtype=None, p_attn_dtype=None,
                                 return_p_attn=True, vmem_budget_bytes=None):
    """Pallas TPU implementation of ScaledDotProductAttention.forward.

    Returns (weighted_value, p_attn), matching the PyTorch module's
    dropout=None path. Set p_attn_dtype=jnp.bfloat16 to halve the dominant
    (B,H,L,L) HBM writeback, or return_p_attn=False to skip it entirely.
    """
    B, H, L, d_k = query.shape
    d_v = value.shape[-1]
    if key.shape != (B, H, L, d_k):
        raise ValueError(f"key shape {key.shape} != {(B, H, L, d_k)}")
    if value.shape[:3] != (B, H, L):
        raise ValueError(f"value shape {value.shape} incompatible with query")

    if mask is None:
        mask = jnp.ones((B, 1, 1, L), dtype=jnp.int32)
    if mask.shape == (B, 1, 1, L):
        per_row_mask = False
    elif mask.shape == (B, 1, L, L):
        per_row_mask = True
    else:
        raise ValueError(f"mask shape {mask.shape} must be (B,1,1,L) or (B,1,L,L)")
    mask = mask.astype(jnp.int32)            # byte/bool masks -> lane-friendly

    if compute_dtype is None:
        # bf16 MXU matmuls when inputs are f32 (f32 accumulation; softmax math
        # stays f32). Pass compute_dtype=jnp.float32 for an exact path.
        compute_dtype = jnp.bfloat16 if query.dtype == jnp.float32 else query.dtype
    if p_attn_dtype is None:
        p_attn_dtype = query.dtype

    scale = 1.0 / math.sqrt(d_k)

    budget, vmem_limit, vmem_cap = _vmem_budget(vmem_budget_bytes)
    hb_cap = 4 if vmem_cap <= 64 * 1024 * 1024 else 8       # v7x: smaller VMEM
    tq_cap = 512 if vmem_cap >= 128 * 1024 * 1024 else 256   # v5e/v6e: go big
    hb, tq, kv_buffers = _pick_tiles(
        H, L, d_k, d_v, per_row_mask, query.dtype, query.dtype, p_attn_dtype,
        compute_dtype, return_p_attn, budget, hb_cap, tq_cap)

    grid = (B, H // hb, L // tq)
    kernel = functools.partial(_sdpa_kernel, scale=scale,
                               compute_dtype=compute_dtype)

    q_spec = pl.BlockSpec((1, hb, tq, d_k), lambda b, h, q: (b, h, q, 0))
    if kv_buffers == 1:
        # K/V block index is invariant across the inner q axis; single-buffer
        # them to free VMEM for a larger query tile (v7x 64 MiB).
        k_spec = pl.BlockSpec((1, hb, L, d_k), lambda b, h, q: (b, h, 0, 0),
                              pipeline_mode=pl.Buffered(1))
        v_spec = pl.BlockSpec((1, hb, L, d_v), lambda b, h, q: (b, h, 0, 0),
                              pipeline_mode=pl.Buffered(1))
    else:
        k_spec = pl.BlockSpec((1, hb, L, d_k), lambda b, h, q: (b, h, 0, 0))
        v_spec = pl.BlockSpec((1, hb, L, d_v), lambda b, h, q: (b, h, 0, 0))
    if per_row_mask:
        m_spec = pl.BlockSpec((1, 1, tq, L), lambda b, h, q: (b, 0, q, 0))
    else:
        m_spec = pl.BlockSpec((1, 1, 1, L), lambda b, h, q: (b, 0, 0, 0))

    out_shapes = [jax.ShapeDtypeStruct((B, H, L, d_v), query.dtype)]
    out_specs = [pl.BlockSpec((1, hb, tq, d_v), lambda b, h, q: (b, h, q, 0))]
    if return_p_attn:
        out_shapes.append(jax.ShapeDtypeStruct((B, H, L, L), p_attn_dtype))
        out_specs.append(pl.BlockSpec((1, hb, tq, L), lambda b, h, q: (b, h, q, 0)))

    result = pl.pallas_call(
        kernel,
        out_shape=out_shapes,
        grid_spec=pltpu.PrefetchScalarGridSpec(
            num_scalar_prefetch=0,
            grid=grid,
            in_specs=[q_spec, k_spec, v_spec, m_spec],
            out_specs=out_specs,
        ),
        compiler_params=pltpu.CompilerParams(
            # Row-local softmax -> every grid axis independent; both v7x
            # TensorCores can split the grid.
            dimension_semantics=("parallel", "parallel", "parallel"),
            vmem_limit_bytes=vmem_limit,
        ),
    )(query, key, value, mask)

    if return_p_attn:
        out, p_attn = result
        return out, p_attn
    (out,) = result
    return out, None


def _reference(query, key, value, mask, compute_dtype=jnp.float32):
    """Pure-JAX reference. compute_dtype=f32 is the exact module semantics;
    bfloat16 mirrors the kernel's fast path (casts only at matmul boundaries)."""
    d_k = query.shape[-1]
    f32 = jnp.float32
    prec = "highest" if compute_dtype == jnp.float32 else None
    q = (query.astype(f32) / math.sqrt(d_k)).astype(compute_dtype)
    scores = jnp.einsum("bhqd,bhkd->bhqk", q, key.astype(compute_dtype),
                        precision=prec, preferred_element_type=f32)
    scores = jnp.where(mask == 0, f32(-1e9), scores)
    p = jax.nn.softmax(scores, axis=-1)
    out = jnp.einsum("bhqk,bhkd->bhqd", p.astype(compute_dtype),
                     value.astype(compute_dtype),
                     precision=prec, preferred_element_type=f32)
    return out.astype(query.dtype), p


if __name__ == "__main__":
    # Module-consistent small shapes: batch=2, heads=2, max_len=8, d_k=d_v=32.
    B, H, L, D = 2, 2, 8, 32
    rng = jax.random.PRNGKey(0)
    kq, kk, kv, km = jax.random.split(rng, 4)

    query = jax.random.normal(kq, (B, H, L, D), dtype=jnp.float32)
    key = jax.random.normal(kk, (B, H, L, D), dtype=jnp.float32)
    value = jax.random.normal(kv, (B, H, L, D), dtype=jnp.float32)
    # Padding mask (B, 1, 1, L), byte-like {0,1}; keep position 0 unmasked.
    mask = (jax.random.uniform(km, (B, 1, 1, L)) > 0.3).astype(jnp.int32)
    mask = mask.at[:, :, :, 0].set(1)

    ref_out, ref_p = _reference(query, key, value, mask)                 # exact
    ref_out_bf, ref_p_bf = _reference(query, key, value, mask,
                                      compute_dtype=jnp.bfloat16)        # fast mirror

    # 1) Exact path (f32 matmuls) vs the module-exact reference.
    out32, p32 = scaled_dot_product_attention(query, key, value, mask,
                                              compute_dtype=jnp.float32)
    jax.block_until_ready((out32, p32))
    assert jnp.allclose(out32, ref_out, atol=1e-4, rtol=1e-4)
    assert jnp.allclose(p32, ref_p, atol=1e-4, rtol=1e-4)

    # 2) Default fast path (bf16 matmuls, f32 softmax).
    out_bf, p_bf = scaled_dot_product_attention(query, key, value, mask)
    jax.block_until_ready((out_bf, p_bf))
    assert jnp.allclose(out_bf, ref_out_bf, atol=1e-2, rtol=1e-2)
    assert jnp.allclose(p_bf, ref_p_bf, atol=1e-2, rtol=1e-2)
    assert jnp.allclose(out_bf, ref_out, atol=2e-1, rtol=2e-1)

    # 3) out-only variant: skips the (B, H, L, L) p_attn HBM writeback.
    out_only, p_none = scaled_dot_product_attention(query, key, value, mask,
                                                    return_p_attn=False)
    jax.block_until_ready(out_only)
    assert p_none is None
    assert jnp.allclose(out_only, ref_out_bf, atol=1e-2, rtol=1e-2)

    # 4) bf16 p_attn output (halves the dominant HBM traffic).
    out_b, p_b = scaled_dot_product_attention(query, key, value, mask,
                                              p_attn_dtype=jnp.bfloat16)
    jax.block_until_ready((out_b, p_b))
    assert jnp.allclose(p_b.astype(jnp.float32), ref_p_bf, atol=1e-2, rtol=1e-2)

    # 5) Per-row (causal-style) mask of shape (B, 1, L, L).
    causal = jnp.broadcast_to(jnp.tril(jnp.ones((L, L), jnp.int32))[None, None],
                              (B, 1, L, L))
    ref_out_c, ref_p_c = _reference(query, key, value, causal)
    out_c, p_c = scaled_dot_product_attention(query, key, value, causal,
                                              compute_dtype=jnp.float32)
    jax.block_until_ready((out_c, p_c))
    assert jnp.allclose(out_c, ref_out_c, atol=1e-4, rtol=1e-4)
    assert jnp.allclose(p_c, ref_p_c, atol=1e-4, rtol=1e-4)

    # TODO(synk): nn.Dropout on p_attn and the host-side p_attn.detach().numpy()
    # / self.i bookkeeping in the PyTorch module have no in-kernel equivalent;
    # the default (dropout=None) forward path is implemented.
    print("KERNEL_OK")
</pallas_src>

<mosaic_0001>
module attributes {stable_mosaic.version = 11 : i64} {
  func.func @_sdpa_kernel(%arg0: i32, %arg1: i32, %arg2: i32, %arg3: memref<1x2x8x32xf32, #tpu.memory_space<vmem>>, %arg4: memref<1x2x8x32xf32, #tpu.memory_space<vmem>>, %arg5: memref<1x2x8x32xf32, #tpu.memory_space<vmem>>, %arg6: memref<1x1x1x8xi32, #tpu.memory_space<vmem>>, %arg7: memref<1x2x8x32xf32, #tpu.memory_space<vmem>>, %arg8: memref<1x2x8x8xf32, #tpu.memory_space<vmem>>) attributes {dimension_semantics = [#tpu.dimension_semantics<parallel>, #tpu.dimension_semantics<parallel>, #tpu.dimension_semantics<parallel>], iteration_bounds = array<i64: 2, 1, 1>, scalar_prefetch = 0 : i64, scratch_operands = 0 : i64, tpu.core_type = #tpu.core_type<tc>, window_params = [{transform_indices = @transform_0, window_bounds = array<i64: 1, 2, 8, 32>}, {transform_indices = @transform_1, window_bounds = array<i64: 1, 2, 8, 32>}, {transform_indices = @transform_2, window_bounds = array<i64: 1, 2, 8, 32>}, {transform_indices = @transform_3, window_bounds = array<i64: 1, 1, 1, 8>}, {transform_indices = @transform_4, window_bounds = array<i64: 1, 2, 8, 32>}, {transform_indices = @transform_5, window_bounds = array<i64: 1, 2, 8, 8>}]} {
    %c0 = arith.constant 0 : index
    %c0_0 = arith.constant 0 : index
    %c0_1 = arith.constant 0 : index
    %c0_2 = arith.constant 0 : index
    %0 = vector.load %arg3[%c0, %c0_0, %c0_1, %c0_2] : memref<1x2x8x32xf32, #tpu.memory_space<vmem>>, vector<1x2x8x32xf32>
    %1 = vector.shape_cast %0 : vector<1x2x8x32xf32> to vector<2x8x32xf32>
    %cst = arith.constant 0.176776692 : f32
    %2 = vector.broadcast %cst : f32 to vector<2x8x32xf32>
    %3 = arith.mulf %1, %2 : vector<2x8x32xf32>
    %c0_3 = arith.constant 0 : index
    %c0_4 = arith.constant 0 : index
    %c0_5 = arith.constant 0 : index
    %c0_6 = arith.constant 0 : index
    %4 = vector.load %arg4[%c0_3, %c0_4, %c0_5, %c0_6] : memref<1x2x8x32xf32, #tpu.memory_space<vmem>>, vector<1x2x8x32xf32>
    %5 = vector.shape_cast %4 : vector<1x2x8x32xf32> to vector<2x8x32xf32>
    %c0_7 = arith.constant 0 : index
    %c0_8 = arith.constant 0 : index
    %c0_9 = arith.constant 0 : index
    %c0_10 = arith.constant 0 : index
    %6 = vector.load %arg5[%c0_7, %c0_8, %c0_9, %c0_10] : memref<1x2x8x32xf32, #tpu.memory_space<vmem>>, vector<1x2x8x32xf32>
    %7 = vector.shape_cast %6 : vector<1x2x8x32xf32> to vector<2x8x32xf32>
    %cst_11 = arith.constant dense<0.000000e+00> : vector<2x8x8xf32>
    %8 = tpu.matmul %3, %5, %cst_11 {dimension_numbers = #tpu.dot_dimension_numbers<[2], [2], [1], [1], [0, 0, 0, 1, 1, 1], [0], [0]>, precision = #tpu.contract_precision<fp32>} : vector<2x8x32xf32>, vector<2x8x32xf32>, vector<2x8x8xf32> -> vector<2x8x8xf32>
    %c0_12 = arith.constant 0 : index
    %c0_13 = arith.constant 0 : index
    %c0_14 = arith.constant 0 : index
    %c0_15 = arith.constant 0 : index
    %9 = vector.load %arg6[%c0_12, %c0_13, %c0_14, %c0_15] : memref<1x1x1x8xi32, #tpu.memory_space<vmem>>, vector<1x1x1x8xi32>
    %10 = vector.shape_cast %9 : vector<1x1x1x8xi32> to vector<1x8xi32>
    %c0_i32 = arith.constant 0 : i32
    %11 = vector.broadcast %c0_i32 : i32 to vector<1x8xi32>
    %12 = arith.cmpi eq, %10, %11 : vector<1x8xi32>
    %13 = vector.shape_cast %12 : vector<1x8xi1> to vector<1x1x8xi1>
    %cst_16 = arith.constant -1.000000e+09 : f32
    %14 = vector.shape_cast %13 : vector<1x1x8xi1> to vector<1x1x8xi1>
    %15 = vector.broadcast %14 : vector<1x1x8xi1> to vector<2x8x8xi1>
    %16 = vector.broadcast %cst_16 : f32 to vector<2x8x8xf32>
    %17 = arith.select %15, %16, %8 : vector<2x8x8xi1>, vector<2x8x8xf32>
    %cst_17 = arith.constant dense<0xFF800000> : vector<2x8xf32>
    %18 = vector.multi_reduction <maximumf>, %17, %cst_17 [2] : vector<2x8x8xf32> to vector<2x8xf32>
    %19 = vector.shape_cast %18 : vector<2x8xf32> to vector<2x8x1xf32>
    %20 = vector.broadcast %19 : vector<2x8x1xf32> to vector<2x8x8xf32>
    %21 = arith.subf %17, %20 : vector<2x8x8xf32>
    %22 = math.exp %21 : vector<2x8x8xf32>
    %cst_18 = arith.constant dense<0.000000e+00> : vector<2x8xf32>
    %23 = vector.multi_reduction <add>, %22, %cst_18 [2] : vector<2x8x8xf32> to vector<2x8xf32>
    %24 = vector.shape_cast %23 : vector<2x8xf32> to vector<2x8x1xf32>
    %25 = vector.broadcast %24 : vector<2x8x1xf32> to vector<2x8x8xf32>
    %26 = arith.divf %22, %25 : vector<2x8x8xf32>
    %c0_19 = arith.constant 0 : index
    %c0_20 = arith.constant 0 : index
    %c0_21 = arith.constant 0 : index
    %c0_22 = arith.constant 0 : index
    %27 = vector.load %arg8[%c0_19, %c0_20, %c0_21, %c0_22] : memref<1x2x8x8xf32, #tpu.memory_space<vmem>>, vector<1x2x8x8xf32>
    %28 = vector.shape_cast %27 : vector<1x2x8x8xf32> to vector<2x8x8xf32>
    %29 = vector.shape_cast %26 : vector<2x8x8xf32> to vector<1x2x8x8xf32>
    tpu.vector_store %arg8[%c0_19, %c0_20, %c0_21, %c0_22], %29 {strides = array<i32>} : memref<1x2x8x8xf32, #tpu.memory_space<vmem>>, vector<1x2x8x8xf32>,
    %cst_23 = arith.constant dense<0.000000e+00> : vector<2x8x32xf32>
    %30 = tpu.matmul %26, %7, %cst_23 {dimension_numbers = #tpu.dot_dimension_numbers<[2], [1], [1], [2], [0, 0, 0, 1, 1, 2], [0], [0]>, precision = #tpu.contract_precision<fp32>} : vector<2x8x8xf32>, vector<2x8x32xf32>, vector<2x8x32xf32> -> vector<2x8x32xf32>
    %c0_24 = arith.constant 0 : index
    %c0_25 = arith.constant 0 : index
    %c0_26 = arith.constant 0 : index
    %c0_27 = arith.constant 0 : index
    %31 = vector.load %arg7[%c0_24, %c0_25, %c0_26, %c0_27] : memref<1x2x8x32xf32, #tpu.memory_space<vmem>>, vector<1x2x8x32xf32>
    %32 = vector.shape_cast %31 : vector<1x2x8x32xf32> to vector<2x8x32xf32>
    %33 = vector.shape_cast %30 : vector<2x8x32xf32> to vector<1x2x8x32xf32>
    tpu.vector_store %arg7[%c0_24, %c0_25, %c0_26, %c0_27], %33 {strides = array<i32>} : memref<1x2x8x32xf32, #tpu.memory_space<vmem>>, vector<1x2x8x32xf32>,
    return
  }
  func.func @transform_0(%arg0: i32, %arg1: i32, %arg2: i32) -> (i32, i32, i32, i32) {
    %c0_i32 = arith.constant 0 : i32
    %c0_i32_0 = arith.constant 0 : i32
    return %arg0, %arg1, %arg2, %c0_i32 : i32, i32, i32, i32
  }
  func.func @transform_1(%arg0: i32, %arg1: i32, %arg2: i32) -> (i32, i32, i32, i32) {
    %c0_i32 = arith.constant 0 : i32
    %c0_i32_0 = arith.constant 0 : i32
    %c0_i32_1 = arith.constant 0 : i32
    return %arg0, %arg1, %c0_i32, %c0_i32_0 : i32, i32, i32, i32
  }
  func.func @transform_2(%arg0: i32, %arg1: i32, %arg2: i32) -> (i32, i32, i32, i32) {
    %c0_i32 = arith.constant 0 : i32
    %c0_i32_0 = arith.constant 0 : i32
    %c0_i32_1 = arith.constant 0 : i32
    return %arg0, %arg1, %c0_i32, %c0_i32_0 : i32, i32, i32, i32
  }
  func.func @transform_3(%arg0: i32, %arg1: i32, %arg2: i32) -> (i32, i32, i32, i32) {
    %c0_i32 = arith.constant 0 : i32
    %c0_i32_0 = arith.constant 0 : i32
    %c0_i32_1 = arith.constant 0 : i32
    %c0_i32_2 = arith.constant 0 : i32
    return %arg0, %c0_i32, %c0_i32_0, %c0_i32_1 : i32, i32, i32, i32
  }
  func.func @transform_4(%arg0: i32, %arg1: i32, %arg2: i32) -> (i32, i32, i32, i32) {
    %c0_i32 = arith.constant 0 : i32
    %c0_i32_0 = arith.constant 0 : i32
    return %arg0, %arg1, %arg2, %c0_i32 : i32, i32, i32, i32
  }
  func.func @transform_5(%arg0: i32, %arg1: i32, %arg2: i32) -> (i32, i32, i32, i32) {
    %c0_i32 = arith.constant 0 : i32
    %c0_i32_0 = arith.constant 0 : i32
    return %arg0, %arg1, %arg2, %c0_i32 : i32, i32, i32, i32
  }
}

</mosaic_0001>

<bundles_post_ra>
// kernel: tpu_custom_call.1
= control target key start
LH: loop header
LB: loop body
LE: loop exit
PB: predicated region body
PF: predicated region fallthrough
CT: control target
= control target key end

     0   :  { %s3359_s0 = inlined_call_operand.hbm [shape: f32[2,2,8,32], index: 0, kind: input, shape index: {}]   ;;  %s3360_s1 = inlined_call_operand.hbm [shape: f32[2,2,8,32], index: 1, kind: input, shape index: {}]   ;;  %s3361_s2 = inlined_call_operand.hbm [shape: f32[2,2,8,32], index: 2, kind: input, shape index: {}]   ;;  %s3362_s3 = inlined_call_operand.vmem [shape: s32[2,1,1,8], index: 3, kind: input, shape index: {}]   ;;  %s3363_s4 = inlined_call_operand.hbm [shape: f32[2,2,8,32], index: 4, kind: output, shape index: {0}]   ;;  %s3364_s5 = inlined_call_operand.hbm [shape: f32[2,2,8,8], index: 5, kind: output, shape index: {1}]  }
   0x1   :  { %3372 = sst [smem:[#allocation20_spill]] %s3360_s1 }
   0x2   :  { %11 = vsyncpa [#allocation3], 0 }
   0x3   :  { %13 = vsyncpa [#allocation3 + $0x1], 0 }
   0x4   :  { %14 = vsyncpa [#allocation6], 0 }
   0x5   :  { %16 = vsyncpa [#allocation6 + $0x1], 0 }
   0x6   :  { %17 = vsyncpa [#allocation4], 0 }
   0x7   :  { %19 = vsyncpa [#allocation4 + $0x1], 0 }
   0x8   :  { %20 = vsyncpa [#allocation10], 0 }
   0x9   :  { %22 = vsyncpa [#allocation10 + $0x1], 0  ;;  %s3001_s18 = smov 0   ;;  %s3003_s19 = smov 0  }
   0xa   :  { %s3005_s20 = smov 0   ;;  %s3007_s21 = smov 0  }
   0xb   :  { %s3009_s22 = smov 0   ;;  %s3011_s23 = smov 0  }
   0xc LB: > { %3373 = sst [smem:[#allocation15_spill]] %s2937_s18  ;;  %s3032_s24 = sadd.s32 4294967295, %s2957_s23   ;;  %s2957_s23 = sphi %s3011_s23, %s28_s23   ;;  %s2953_s22 = sphi %s3009_s22, %s3392_s22   ;;  %s2949_s21 = sphi %s3007_s21, %s3391_s21   ;;  %s2945_s20 = sphi %s3005_s20, %s3395_s20   ;;  %s2941_s19 = sphi %s3003_s19, %s3394_s19   ;;  %s2937_s18 = sphi %s3001_s18, %s3393_s18  }
   0xd   : > { %3374 = sst [smem:[#allocation16_spill]] %s2953_s22  ;;  %s2468_s25 = sadd.s32 4294967294, %s2957_s23  }
   0xe   : > { %s47_s26 = sadd.s32 1, %s2953_s22  ;;  %s58_s27 = sadd.s32 1, %s2945_s20 }
   0xf   : > { %p49_p0 = scmp.ge.s32.totalorder %s47_s26, 2  ;;  %p65_p1 = scmp.ne.s32.totalorder %s2945_s20, %s2941_s19 }
  0x10   : > { %p66_p2 = scmp.eq.s32.totalorder %s2957_s23, 0  ;;  %p71_p3 = scmp.ne.s32.totalorder %s2941_s19, %s2937_s18 }
  0x11   : > { %s3397_s26 = smov (%p49_p0, %s47_s26), 0  ;;  %p72_p5 = scmp.eq.s32.totalorder %s3032_s24, 0 }
  0x12   : > { %3375 = sst [smem:[#allocation17_spill]] %s3397_s26  ;;  %p3044_p4 = por %p66_p2, %p65_p1 }
  0x13   : > { %s51_s29 = ssub.s32 %s2953_s22, %s3397_s26  ;;  %p181_p6 = scmp.eq.s32.totalorder %s3032_s24, 1 }
  0x14   : > { %p56_p7 = scmp.eq.s32.totalorder %s51_s29, 0  ;;  %p3052_p8 = por %p72_p5, %p71_p3 }
  0x15   : > { %p3056_p9 = por %p181_p6, %p65_p1  ;;  %p187_p10 = scmp.eq.s32.totalorder %s2468_s25, 1 }
  0x16   : > { %s3061_s7 = scalar_select %p56_p7, %s2945_s20, %s58_s27  }
  0x17   : > { %p3063_p11 = por %p187_p10, %p71_p3  ;;  %p2694_p13 = scmp.lt.s32.totalorder %s2957_s23, 2 }
  0x18   : > { %3379 = sst [smem:[#allocation18_spill]] %s3061_s7  ;;  %s3365_s9 = sand.u32 1, %s2945_s20  }
  0x19   : > { %s3380_s8 = scalar_select %p3063_p11, 1, 0 }
  0x1a   : > { %s3072_s10 = sshll.u32 %s3365_s9, 4  ;;  %s3075_s11 = sshll.u32 %s2953_s22, 8 }
  0x1b   : > { %3381 = sst [smem:[#allocation19_spill]] %s3380_s8  ;;  %p3079_p0 = pnand %p2694_p13, %p3044_p4 }
  0x1c   : > { %s261_s13 = sand.u32 1, %s2957_s23   ;;  %s3383_s1 = sld [smem:[#allocation20_spill]] }
  0x1d   : > { %s265_s17 = scalar_lea.vmem [#allocation5], %s3072_s10  ;;  %p2480_p1 = scmp.ge.s32.totalorder %s2957_s23, 1 }
  0x1e   : > { %s274_s25 = sshll.u32 %s265_s17, 4  ;;  %p311_p2 = scmp.lt.s32.totalorder %s2957_s23, 3  ;;  %s275_s25 = int_to_ptr.vmem [resolvable:$true] %s274_s25 }
  0x1f   : > { %s3091_s27 = scalar_lea.sflag [#allocation6], %s261_s13  ;;  %p2761_p3 = pneg %p3079_p0 }
  0x20   : > { %s2772_s28 = scalar_lea.vmem %s275_s25, 256  ;;  %s2959_s29 = smov [#allocation5]  }
  0x21   : > { %p2773_p4 = scmp.ne.s32.totalorder %s275_s25, %s2772_s28  ;;  %s2777_s9 = sshll.u32 %s2959_s29, 4  ;;  %s2778_s9 = int_to_ptr.vmem [resolvable:$false] %s2777_s9 }
  0x22   : > { %s273_s16 = scalar_lea.hbm %s3383_s1, %s3075_s11  ;;  %s2779_s14 = scalar_lea.vmem %s2778_s9, 512 }
  0x23   : > { %p2775_p5 = pnand %p2773_p4, %p2761_p3  ;;  %p2780_p7 = scmp.lt.s32.totalorder %s275_s25, %s2778_s9 }
  0x24   : > { %p2781_p10 = scmp.lt.s32.totalorder %s2779_s14, %s2772_s28 }
  0x25   : > { %p2776_p6 = pneg %p2775_p5 }
  0x26   : > { %p2782_p13 = por %p2781_p10, %p2780_p7 }
  0x28   : > { %p2783_p12 = pnand %p2782_p13, %p2776_p6 }
  0x2a   : > { %2786 = shalt.err (!%p2783_p12)
}
  0x2b   : > { %s3370_s15 = smov 128   ;;  %s2961_s13 = smov 8  }
  0x2c   : > { %2683 = dma.hbm_to_vmem [thread:$0]  (!%p3079_p0), %s273_s16, 256, %s275_s25, %s3091_s27, %s3370_s15, %s3370_s15, %s2961_s13  }
  0x2d   : > { %p3108_p4 = pnand %p2480_p1, %p311_p2  ;;  %s250_s29 = scalar_lea.hbm %s3359_s0, %s3075_s11 }
  0x2e   : > { %s241_s14 = scalar_lea.vmem [#allocation2], %s3072_s10  ;;  %s296_s7 = scalar_lea.hbm %s3361_s2, %s3075_s11 }
  0x2f   : > { %s251_s1 = sshll.u32 %s241_s14, 4  ;;  %s3385_s8 = sand.u32 1, %s2945_s20   ;;  %s252_s1 = int_to_ptr.vmem [resolvable:$true] %s251_s1 }
  0x30   : > { %s238_s18 = scalar_lea.sflag [#allocation3], %s3385_s8  ;;  %s2800_s16 = scalar_lea.vmem %s252_s1, 256 }
  0x31   : > { %p2801_p12 = scmp.ne.s32.totalorder %s252_s1, %s2800_s16  ;;  %s2962_s25 = smov [#allocation2]  }
  0x32   : > { %s2805_s15 = sshll.u32 %s2962_s25, 4  ;;  %s2806_s15 = int_to_ptr.vmem [resolvable:$false] %s2805_s15 }
  0x33   : > { %p2803_p1 = pnand %p2801_p12, %p2761_p3  ;;  %s2807_s17 = scalar_lea.vmem %s2806_s15, 512 }
  0x34   : > { %p2808_p5 = scmp.lt.s32.totalorder %s252_s1, %s2806_s15  ;;  %p2809_p6 = scmp.lt.s32.totalorder %s2807_s17, %s2800_s16 }
  0x35   : > { %p2804_p2 = pneg %p2803_p1 }
  0x36   : > { %p2810_p7 = por %p2809_p6, %p2808_p5 }
  0x38   : > { %p2811_p10 = pnand %p2810_p7, %p2804_p2 }
  0x3a   : > { %2814 = shalt.err (!%p2811_p10)
}
  0x3b   : > { %s3386_s22 = smov 128   ;;  %s288_s26 = scalar_lea.vmem [#allocation7], %s3072_s10 }
  0x3c   : > { %2680 = dma.hbm_to_vmem [thread:$0]  (!%p3079_p0), %s250_s29, 256, %s252_s1, %s238_s18, %s3386_s22, %s3386_s22, %s2961_s13  }
  0x3d   : > { %s297_s8 = sshll.u32 %s288_s26, 4  ;;  %s2963_s15 = smov [#allocation7]   ;;  %s298_s8 = int_to_ptr.vmem [resolvable:$true] %s297_s8 }
  0x3e   : > { %s2828_s28 = scalar_lea.vmem %s298_s8, 256  ;;  %s2833_s14 = sshll.u32 %s2963_s15, 4  ;;  %s2834_s14 = int_to_ptr.vmem [resolvable:$false] %s2833_s14 }
  0x3f   : > { %p2829_p13 = scmp.ne.s32.totalorder %s298_s8, %s2828_s28  ;;  %s2835_s16 = scalar_lea.vmem %s2834_s14, 512 }
  0x40   : > { %p2836_p2 = scmp.lt.s32.totalorder %s298_s8, %s2834_s14  ;;  %p2837_p5 = scmp.lt.s32.totalorder %s2835_s16, %s2828_s28 }
  0x41   : > { %p2831_p12 = pnand %p2829_p13, %p2761_p3 }
  0x42   : > { %p2838_p6 = por %p2837_p5, %p2836_p2 }
  0x43   : > { %p2832_p1 = pneg %p2831_p12 }
  0x45   : > { %p2839_p7 = pnand %p2838_p6, %p2832_p1 }
  0x47   : > { %2842 = shalt.err (!%p2839_p7)
}
  0x48   : > { %2686 = dma.hbm_to_vmem [thread:$0]  (!%p3079_p0), %s296_s7, 256, %s298_s8, %s3091_s27, %s3386_s22, %s3386_s22, %s2961_s13  }
  0x49   : > { %315 = sbr.rel (%p3108_p4) target bundleno = 856 (0x358), region = 36  ;;  %s3149_s10 = sand.u32 (!%p3108_p4), 1, %s2941_s19  }
  0x4a   : > { %s3152_s12 = sshll.u32 (!%p3108_p4), %s3149_s10, 4  ;;  %s318_s29 = scalar_lea.sflag (!%p3108_p4), [#allocation3], %s3149_s10 }
  0x4b   : > { %s321_s25 = scalar_lea.vmem (!%p3108_p4), [#allocation2], %s3152_s12 }
  0x4e   : > { %2920 = dma.done.wait (%p3052_p8), %s318_s29, 256  }
  0x4f   : > { %2922 = vsyncadd (%p3052_p8), %s318_s29, 4294967040  ;;  %s326_s7 = sand.u32 1, %s3032_s24   ;;  %s330_s27 = scalar_lea.vmem [#allocation5], %s3152_s12 }
  0x50   : > { %s327_s11 = scalar_lea.sflag [#allocation6], %s326_s7 }
  0x51   : > { %2924 = dma.done.wait (%p3052_p8), %s327_s11, 512  }
  0x52   : > { %2926 = vsyncadd (%p3052_p8), %s327_s11, 4294966784  ;;  %v2964_v0 = vmov 0.0   ;;  %vm2965_vm0 = vmmov 0   ;;  %vm400_vm1 = vcmask 261120   ;;  %v396_v1 = vld [vmem:[%s330_s27] sm:$0xff]  ;;  %v397_v3 = vld [vmem:[%s330_s27 + $0x8] sm:$0xff]  ;;  %v1308_v31 = vlaneseq }
  0x53   : > { %2547 = vmatprep.subr.mxu0 %v2964_v0  ;;  %2552 = vmatprep.subr.mxu1 %v2964_v0  ;;  %v392_v2 = vld [vmem:[%s321_s25] sm:$0xff]  ;;  %v405_v4 = vsel %vm400_vm1, %v396_v1, 0  ;;  %v857_v6 = vsel %vm400_vm1, %v397_v3, 0  ;;  %v393_v7 = vld [vmem:[%s321_s25 + $0x8] sm:$0xff]  ;;  %p387_p8 = scmp.lt.s32.totalorder %s2949_s21, 1  ;;  %v2966_v40 = vmov 0  }
  0x54   : > { %2549 = vmatprep.mubr.msk.f32.mxu0 %vm2965_vm0, %v2964_v0  ;;  %2554 = vmatprep.mubr.msk.f32.mxu1 %vm2965_vm0, %v2964_v0  ;;  %v394_v5 = vmul.f32 0.17677669, %v392_v2  ;;  %v438_v8 = vand.u32 4294901760, %v405_v4  ;;  %v395_v9 = vmul.f32 0.17677669, %v393_v7  ;;  %v890_v13 = vand.u32 4294901760, %v857_v6 }
  0x55   : > { %s388_s24 = scalar_select %p387_p8, %s2949_s21, 1  ;;  %v1309_v33 = vshrl.u32 %v1308_v31, 7  ;;  %vm1315_vm4 = vcmask 64512  }
  0x56   : > { %v402_v10 = vsel %vm400_vm1, %v394_v5, 0  ;;  %2548 = vmatpush3.xpose.msra.mxu0 %v438_v8  ;;  %v515_v11 = vsub.f32 %v405_v4, %v438_v8  ;;  %v854_v14 = vsel %vm400_vm1, %v395_v9, 0  ;;  %v967_v20 = vsub.f32 %v857_v6, %v890_v13  ;;  %s339_s17 = scalar_lea.vmem [#allocation7], %s3152_s12  ;;  %s3228_s22 = scalar_lea.vmem [#allocation9], %s3152_s12 }
  0x57   : > { %v473_v12 = vand.u32 4294901760, %v402_v10  ;;  %2557 = vmatprep.subr.mxu0 %v2964_v0  ;;  %v925_v17 = vand.u32 4294901760, %v854_v14  ;;  %s389_s9 = scalar_lea.vmem %s3362_s3, %s388_s24  ;;  %v1310_v38 = vsub.s32 0, %v1309_v33  ;;  %s2497_s26 = sshll.u32 %s2949_s21, 8 }
  0x58   : > { %v516_v15 = vand.u32 4294901760, %v515_v11  ;;  %v968_v25 = vand.u32 4294901760, %v967_v20  ;;  %v1305_v32 = vld [vmem:[%s389_s9] sm:$0x1]  ;;  %s3269_s15 = scalar_lea.hbm %s3364_s5, %s2497_s26  ;;  %s2281_s14 = sshll.u32 %s3228_s22, 4  ;;  %s3272_s14 = int_to_ptr.vmem [resolvable:$true] %s2281_s14 }
  0x59   : > { %v474_v16 = vsub.f32 %v402_v10, %v473_v12  ;;  %v926_v23 = vsub.f32 %v854_v14, %v925_v17  ;;  %vm1306_vm2 = vcmp.eq.s32.totalorder %v1305_v32, 0  ;;  %s2246_s16 = scalar_lea.sflag [#allocation10], %s3149_s10  ;;  %s2843_s1 = scalar_lea.vmem %s3272_s14, 256 }
  0x5a   : > { %v517_v18 = vsub.f32 %v515_v11, %v516_v15  ;;  %v969_v27 = vsub.f32 %v967_v20, %v968_v25  ;;  %v1307_v41 = vsel %vm1306_vm2, 1, %v2966_v40  ;;  %p2844_p0 = scmp.ne.s32.totalorder %s3272_s14, %s2843_s1  ;;  %s2967_s18 = smov [#allocation9]  }
  0x5b   : > { %v475_v19 = vand.u32 4294901760, %v474_v16  ;;  %v927_v26 = vand.u32 4294901760, %v926_v23  ;;  %v1311_v46 = vrot.slane %v1307_v41, %v1310_v38  ;;  %s2847_s29 = sshll.u32 %s2967_s18, 4  ;;  %s2848_s29 = int_to_ptr.vmem [resolvable:$false] %s2847_s29 }
  0x5c   : > { %v518_v21 = vand.u32 4294901760, %v517_v18  ;;  %v970_v29 = vand.u32 4294901760, %v969_v27  ;;  %p2845_p3 = pnand %p2844_p0, %p3056_p9  ;;  %s2849_s25 = scalar_lea.vmem %s2848_s29, 512 }
  0x5d   : > { %v476_v22 = vsub.f32 %v474_v16, %v475_v19  ;;  %v928_v28 = vsub.f32 %v926_v23, %v927_v26  ;;  %vm1312_vm3 = vcmp.eq.s32.totalorder %v1311_v46, 1  ;;  %p2850_p10 = scmp.lt.s32.totalorder %s3272_s14, %s2848_s29  ;;  %p2851_p13 = scmp.lt.s32.totalorder %s2849_s25, %s2843_s1 }
  0x5e   : > { %2553 = vmatpush3.xpose.msra.mxu1 %v518_v21  ;;  %p2846_p4 = pneg %p2845_p3 }
  0x5f   : > { %v477_v24 = vand.u32 4294901760, %v476_v22  ;;  %2562 = vmatprep.subr.mxu1 %v2964_v0  ;;  %v929_v30 = vand.u32 4294901760, %v928_v28  ;;  %p2852_p12 = por %p2851_p13, %p2850_p10 }
  0x61   : > { %2550 = vmatmul.mubr.f32.vlgmr.msra.gmra.mxu0 %v477_v24  ;;  %2555 = vmatmul.mubr.f32.vlgmr.msra.gmra.mxu1 %v473_v12  ;;  %p2853_p1 = pnand %p2852_p12, %p2846_p4 }
  0x62   : > { %2558 = vmatpush3.xpose.msra.mxu0 %v515_v11  ;;  %2563 = vmatpush3.xpose.msra.mxu1 %v438_v8 }
  0x63   : > { %2559 = vmatprep.mubr.msk.f32.mxu0 %vm2965_vm0, %v2964_v0  ;;  %2567 = vmatprep.subr.mxu0 %v2964_v0 }
  0x64   : > { %2564 = vmatprep.mubr.msk.f32.mxu1 %vm2965_vm0, %v2964_v0  ;;  %2572 = vmatprep.subr.mxu1 %v2964_v0 }
  0x65   : > { %2560 = vmatmul.mubr.f32.vlgmr.msra.gmra.mxu0 %v474_v16  ;;  %2565 = vmatmul.mubr.f32.vlgmr.msra.gmra.mxu1 %v475_v19 }
  0x66   : > { %2568 = vmatpush3.xpose.msra.mxu0 %v516_v15  ;;  %2573 = vmatpush3.xpose.msra.mxu1 %v438_v8 }
  0x67   : > { %2569 = vmatprep.mubr.msk.f32.mxu0 %vm2965_vm0, %v2964_v0  ;;  %2577 = vmatprep.subr.mxu0 %v2964_v0 }
  0x68   : > { %2574 = vmatprep.mubr.msk.f32.mxu1 %vm2965_vm0, %v2964_v0  ;;  %2582 = vmatprep.subr.mxu1 %v2964_v0 }
  0x69   : > { %2570 = vmatmul.mubr.f32.vlgmr.msra.gmra.mxu0 %v473_v12  ;;  %2575 = vmatmul.mubr.f32.vlgmr.msra.gmra.mxu1 %v473_v12 }
  0x6a   : > { %2578 = vmatpush3.xpose.msra.mxu0 %v890_v13  ;;  %2583 = vmatpush3.xpose.msra.mxu1 %v970_v29 }
  0x6b   : > { %2579 = vmatprep.mubr.msk.f32.mxu0 %vm2965_vm0, %v2964_v0  ;;  %2587 = vmatprep.subr.mxu0 %v2964_v0 }
  0x6c   : > { %2584 = vmatprep.mubr.msk.f32.mxu1 %vm2965_vm0, %v2964_v0  ;;  %2592 = vmatprep.subr.mxu1 %v2964_v0 }
  0x6d   : > { %2580 = vmatmul.mubr.f32.vlgmr.msra.gmra.mxu0 %v929_v30  ;;  %2585 = vmatmul.mubr.f32.vlgmr.msra.gmra.mxu1 %v925_v17  ;;  %v399_v30 = vld [vmem:[%s339_s17 + $0x8] sm:$0xff] }
  0x6e   : > { %2588 = vmatpush3.xpose.msra.mxu0 %v967_v20  ;;  %2593 = vmatpush3.xpose.msra.mxu1 %v890_v13  ;;  %v1823_v31 = vand.u32 4294901760, %v399_v30 }
  0x6f   : > { %2589 = vmatprep.mubr.msk.f32.mxu0 %vm2965_vm0, %v2964_v0  ;;  %2597 = vmatprep.subr.mxu0 %v2964_v0 }
  0x70   : > { %2594 = vmatprep.mubr.msk.f32.mxu1 %vm2965_vm0, %v2964_v0  ;;  %2602 = vmatprep.subr.mxu1 %v2964_v0 }
  0x71   : > { %2590 = vmatmul.mubr.f32.vlgmr.msra.gmra.mxu0 %v926_v23  ;;  %2595 = vmatmul.mubr.f32.vlgmr.msra.gmra.mxu1 %v927_v26  ;;  %v398_v23 = vld [vmem:[%s339_s17] sm:$0xff] }
  0x72   : > { %2598 = vmatpush3.xpose.msra.mxu0 %v968_v25  ;;  %2603 = vmatpush3.xpose.msra.mxu1 %v890_v13  ;;  %v1374_v24 = vand.u32 4294901760, %v398_v23 }
  0x73   : > { %2599 = vmatprep.mubr.msk.f32.mxu0 %vm2965_vm0, %v2964_v0  ;;  %2604 = vmatprep.mubr.msk.f32.mxu1 %vm2965_vm0, %v2964_v0 }
  0x74   : > { %2612 = vmatprep.subr.mxu1 %v2964_v0  ;;  %2607 = vmatprep.subr.mxu0 %v2964_v0  ;;  %v1451_v25 = vsub.f32 %v398_v23, %v1374_v24 }
  0x75   : > { %2600 = vmatmul.mubr.f32.vlgmr.msra.gmra.mxu0 %v925_v17  ;;  %2605 = vmatmul.mubr.f32.vlgmr.msra.gmra.mxu1 %v925_v17 }
  0x76   : > { %2609 = vmatprep.mubr.msk.f32.mxu0 %vm2965_vm0, %v2964_v0  ;;  %2614 = vmatprep.mubr.msk.f32.mxu1 %vm2965_vm0, %v2964_v0  ;;  %v1452_v26 = vand.u32 4294901760, %v1451_v25 }
  0x77   : > { %2608 = vmatpush3.msra.mxu0 %v1374_v24 }
  0x78   : > { %2617 = vmatprep.subr.mxu0 %v2964_v0  ;;  %v1453_v27 = vsub.f32 %v1451_v25, %v1452_v26 }
  0x7a   : > { %v1454_v28 = vand.u32 4294901760, %v1453_v27 }
  0x7c   : > { %2613 = vmatpush3.msra.mxu1 %v1454_v28 }
  0x7d   : > { %2622 = vmatprep.subr.mxu1 %v2964_v0 }
 0x121   : > { %v479_v34 = vpop.f32.mrf.mxu0  ;;  %v555_v35 = vpop.f32.mrf.mxu1 }
 0x122   : > { %v556_v36 = vadd.f32 %v555_v35, %v479_v34  ;;  %v1900_v34 = vsub.f32 %v399_v30, %v1823_v31 }
 0x123   : > { %v2551_v37 = vpop.f32.mrf.mxu0  ;;  %v2556_v39 = vpop.f32.mrf.mxu1 }
 0x124   : > { %v1901_v38 = vand.u32 4294901760, %v1900_v34 }
 0x125   : > { %v629_v42 = vpop.f32.mrf.mxu0  ;;  %v703_v44 = vpop.f32.mrf.mxu1 }
 0x126   : > { %v630_v43 = vadd.f32 %v629_v42, %v556_v36  ;;  %v1902_v41 = vsub.f32 %v1900_v34, %v1901_v38 }
 0x127   : > { %v2561_v45 = vpop.f32.mrf.mxu0  ;;  %v2566_v48 = vpop.f32.mrf.mxu1 }
 0x128   : > { %v704_v47 = vadd.f32 %v703_v44, %v630_v43  ;;  %v1903_v45 = vand.u32 4294901760, %v1902_v41 }
 0x129   : > { %v777_v49 = vpop.f32.mrf.mxu0  ;;  %v849_v51 = vpop.f32.mrf.mxu1 }
 0x12a   : > { %v778_v50 = vadd.f32 %v777_v49, %v704_v47 }
 0x12b   : > { %v2571_v52 = vpop.f32.mrf.mxu0  ;;  %v2576_v54 = vpop.f32.mrf.mxu1 }
 0x12c   : > { %v850_v53 = vadd.f32 %v849_v51, %v778_v50 }
 0x12d   : > { %v931_v55 = vpop.f32.mrf.mxu0  ;;  %v1007_v56 = vpop.f32.mrf.mxu1 }
 0x12e   : > { %v1313_v57 = vsel %vm1312_vm3, -1e+09, %v850_v53  ;;  %v1008_v58 = vadd.f32 %v1007_v56, %v931_v55 }
 0x12f   : > { %v2581_v59 = vpop.f32.mrf.mxu0  ;;  %v1316_v60 = vsel %vm1315_vm4, %v1313_v57, -inf  ;;  %v2586_v61 = vpop.f32.mrf.mxu1 }
 0x130   : > { %1317 = vmax.xlane.f32.xlu0 %v1316_v60 }
 0x131   : > { %v1081_v62 = vpop.f32.mrf.mxu0  ;;  %v1155_v1 = vpop.f32.mrf.mxu1 }
 0x132   : > { %v1082_v63 = vadd.f32 %v1081_v62, %v1008_v58 }
 0x133   : > { %v2591_v2 = vpop.f32.mrf.mxu0  ;;  %v2596_v4 = vpop.f32.mrf.mxu1 }
 0x134   : > { %v1156_v3 = vadd.f32 %v1155_v1, %v1082_v63 }
 0x135   : > { %v1229_v5 = vpop.f32.mrf.mxu0  ;;  %v1301_v7 = vpop.f32.mrf.mxu1 }
 0x136   : > { %v1230_v6 = vadd.f32 %v1229_v5, %v1156_v3 }
 0x137   : > { %v2601_v8 = vpop.f32.mrf.mxu0  ;;  %v2606_v10 = vpop.f32.mrf.mxu1 }
 0x138   : > { %v1302_v9 = vadd.f32 %v1301_v7, %v1230_v6 }
 0x13a   : > { %v1314_v11 = vsel %vm1312_vm3, -1e+09, %v1302_v9 }
 0x13b   : > { %v1319_v12 = vsel %vm1315_vm4, %v1314_v11, -inf }
 0x13c   : > { %1320 = vmax.xlane.f32.xlu0 %v1319_v12 }
 0x1b9   : > { %v1318_v13 = vpop.xlane.xlu0 %1317 }
 0x1ba   : > { %v1322_v14 = vsub.f32 %v1313_v57, %v1318_v13 }
 0x1bc   : > { %v1324_v15 = vmul.f32 1.442695, %v1322_v14 }
 0x1be   : > { %2751 = vpow2.f32 %v1324_v15 }
 0x1c5   : > { %v1321_v16 = vpop.xlane.xlu0 %1320 }
 0x1c6   : > { %v1323_v17 = vsub.f32 %v1314_v11, %v1321_v16 }
 0x1c8   : > { %v1326_v18 = vmul.f32 1.442695, %v1323_v17 }
 0x1ca   : > { %2753 = vpow2.f32 %v1326_v18 }
 0x1cb   : > { %v2752_v19 = vpop.eup %2751 }
 0x1cc   : > { %v1328_v20 = vsel %vm1315_vm4, %v2752_v19, 0.0 }
 0x1cd   : > { %1329 = vadd.xlane.f32.xlu1 %v1328_v20 }
 0x1d7   : > { %v2754_v21 = vpop.eup %2753 }
 0x1d8   : > { %v1331_v22 = vsel %vm1315_vm4, %v2754_v21, 0.0 }
 0x1d9   : > { %1332 = vadd.xlane.f32.xlu1 %v1331_v22 }
 0x256   : > { %v1330_v29 = vpop.xlane.xlu1 %1329 }
 0x257   : > { %2755 = vrcp.f32 %v1330_v29 }
 0x262   : > { %v1333_v32 = vpop.xlane.xlu1 %1332 }
 0x263   : > { %2757 = vrcp.f32 %v1333_v32 }
 0x264   : > { %v2756_v33 = vpop.eup %2755 }
 0x265   : > { %v1335_v35 = vmul.f32 %v2756_v33, %v2752_v19 }
 0x267   : > { %v1341_v36 = vsel %vm1315_vm4, %v1335_v35, 0  ;;  %1338 = vst.msk [vmem:[%s3228_s22] sm:$0xff] %vm1315_vm4, %v1335_v35 }
 0x268   : > { %v1409_v37 = vand.u32 4294901760, %v1341_v36 }
 0x26a   : > { %v1410_v39 = vsub.f32 %v1341_v36, %v1409_v37  ;;  %2615 = vmatmul.mubr.f32.vlgmr.msra.gmra.mxu1 %v1409_v37 }
 0x26b   : > { %2623 = vmatpush3.msra.mxu1 %v1374_v24  ;;  %2624 = vmatprep.mubr.msk.f32.mxu1 %vm2965_vm0, %v2964_v0 }
 0x26c   : > { %v1411_v40 = vand.u32 4294901760, %v1410_v39  ;;  %2632 = vmatprep.subr.mxu1 %v2964_v0 }
 0x26e   : > { %2625 = vmatmul.mubr.f32.vlgmr.msra.gmra.mxu1 %v1411_v40  ;;  %v1412_v42 = vsub.f32 %v1410_v39, %v1411_v40 }
 0x26f   : > { %2633 = vmatpush3.msra.mxu1 %v1374_v24  ;;  %2634 = vmatprep.mubr.msk.f32.mxu1 %vm2965_vm0, %v2964_v0 }
 0x270   : > { %v2758_v43 = vpop.eup %2757  ;;  %v1413_v44 = vand.u32 4294901760, %v1412_v42  ;;  %2642 = vmatprep.subr.mxu1 %v2964_v0 }
 0x271   : > { %v1337_v46 = vmul.f32 %v2758_v43, %v2754_v21 }
 0x272   : > { %2610 = vmatmul.mubr.f32.vlgmr.msra.gmra.mxu0 %v1413_v44  ;;  %2635 = vmatmul.mubr.f32.vlgmr.msra.gmra.mxu1 %v1409_v37 }
 0x273   : > { %2618 = vmatpush3.msra.mxu0 %v1451_v25  ;;  %2619 = vmatprep.mubr.msk.f32.mxu0 %vm2965_vm0, %v2964_v0  ;;  %v1790_v47 = vsel %vm1315_vm4, %v1337_v46, 0  ;;  %1339 = vst.msk [vmem:[%s3228_s22 + $0x8] sm:$0xff] %vm1315_vm4, %v1337_v46 }
 0x274   : > { %2627 = vmatprep.subr.mxu0 %v2964_v0  ;;  %2643 = vmatpush3.msra.mxu1 %v1903_v45  ;;  %v1858_v48 = vand.u32 4294901760, %v1790_v47 }
 0x275   : > { %2644 = vmatprep.mubr.msk.f32.mxu1 %vm2965_vm0, %v2964_v0  ;;  %2652 = vmatprep.subr.mxu1 %v2964_v0 }
 0x276   : > { %2620 = vmatmul.mubr.f32.vlgmr.msra.gmra.mxu0 %v1410_v39  ;;  %v1859_v49 = vsub.f32 %v1790_v47, %v1858_v48  ;;  %2645 = vmatmul.mubr.f32.vlgmr.msra.gmra.mxu1 %v1858_v48 }
 0x277   : > { %2628 = vmatpush3.msra.mxu0 %v1452_v26  ;;  %2629 = vmatprep.mubr.msk.f32.mxu0 %vm2965_vm0, %v2964_v0 }
 0x278   : > { %2637 = vmatprep.subr.mxu0 %v2964_v0  ;;  %2653 = vmatpush3.msra.mxu1 %v1823_v31  ;;  %v1860_v50 = vand.u32 4294901760, %v1859_v49 }
 0x279   : > { %2654 = vmatprep.mubr.msk.f32.mxu1 %vm2965_vm0, %v2964_v0  ;;  %2662 = vmatprep.subr.mxu1 %v2964_v0 }
 0x27a   : > { %2630 = vmatmul.mubr.f32.vlgmr.msra.gmra.mxu0 %v1409_v37  ;;  %2655 = vmatmul.mubr.f32.vlgmr.msra.gmra.mxu1 %v1860_v50  ;;  %v1861_v51 = vsub.f32 %v1859_v49, %v1860_v50 }
 0x27b   : > { %2638 = vmatpush3.msra.mxu0 %v1823_v31  ;;  %2639 = vmatprep.mubr.msk.f32.mxu0 %vm2965_vm0, %v2964_v0 }
 0x27c   : > { %2647 = vmatprep.subr.mxu0 %v2964_v0  ;;  %2663 = vmatpush3.msra.mxu1 %v1823_v31  ;;  %v1862_v52 = vand.u32 4294901760, %v1861_v51 }
 0x27d   : > { %2664 = vmatprep.mubr.msk.f32.mxu1 %vm2965_vm0, %v2964_v0 }
 0x27e   : > { %2640 = vmatmul.mubr.f32.vlgmr.msra.gmra.mxu0 %v1862_v52  ;;  %2665 = vmatmul.mubr.f32.vlgmr.msra.gmra.mxu1 %v1858_v48 }
 0x27f   : > { %2648 = vmatpush3.msra.mxu0 %v1900_v34  ;;  %2649 = vmatprep.mubr.msk.f32.mxu0 %vm2965_vm0, %v2964_v0 }
 0x280   : > { %2657 = vmatprep.subr.mxu0 %v2964_v0 }
 0x282   : > { %2650 = vmatmul.mubr.f32.vlgmr.msra.gmra.mxu0 %v1859_v49 }
 0x283   : > { %2658 = vmatpush3.msra.mxu0 %v1901_v38  ;;  %2659 = vmatprep.mubr.msk.f32.mxu0 %vm2965_vm0, %v2964_v0 }
 0x286   : > { %2660 = vmatmul.mubr.f32.vlgmr.msra.gmra.mxu0 %v1858_v48 }
 0x287   : > { %2856 = shalt.err (!%p2853_p1)
}
 0x288   : > { %s2857_s7 = scalar_lea.hbm %s3269_s15, 256  ;;  %s2861_s24 = scalar_lea.hbm %s3364_s5, 512 }
 0x289   : > { %p2858_p2 = scmp.ne.s32.totalorder %s3269_s15, %s2857_s7  ;;  %p2862_p7 = scmp.lt.s32.totalorder %s3269_s15, %s3364_s5 }
 0x28a   : > { %p2863_p8 = scmp.lt.s32.totalorder %s2861_s24, %s2857_s7 }
 0x28b   : > { %p2859_p5 = pnand %p2858_p2, %p3056_p9 }
 0x28c   : > { %p2864_p0 = por %p2863_p8, %p2862_p7 }
 0x28d   : > { %p2860_p6 = pneg %p2859_p5 }
 0x28f   : > { %p2865_p3 = pnand %p2864_p0, %p2860_p6 }
 0x291   : > { %2868 = shalt.err (!%p2865_p3)
}
 0x292   : > { %s2968_s9 = smov 128   ;;  %s2969_s17 = smov 8  }
 0x293   : > { %2674 = dma.vmem_to_hbm [thread:$0]  (%p3056_p9), %s3272_s14, 256, %s3269_s15, %s2246_s16, %s2968_s9, %s2968_s9, %s2969_s17  }
 0x294   : > { %s376_s22 = scalar_lea.vmem [#allocation8], %s3152_s12  ;;  %s3307_s12 = scalar_lea.hbm %s3363_s4, %s2497_s26 }
 0x295   : > { %s2262_s8 = sshll.u32 %s376_s22, 4  ;;  %s2241_s14 = scalar_lea.sflag [#allocation4], %s3149_s10  ;;  %s3309_s8 = int_to_ptr.vmem [resolvable:$true] %s2262_s8 }
 0x296   : > { %s2869_s16 = scalar_lea.vmem %s3309_s8, 256  ;;  %s2970_s1 = smov [#allocation8]  }
 0x297   : > { %p2870_p4 = scmp.ne.s32.totalorder %s3309_s8, %s2869_s16  ;;  %s2873_s21 = sshll.u32 %s2970_s1, 4  ;;  %s2874_s21 = int_to_ptr.vmem [resolvable:$false] %s2873_s21 }
 0x298   : > { %s2875_s18 = scalar_lea.vmem %s2874_s21, 512  ;;  %p2876_p12 = scmp.lt.s32.totalorder %s3309_s8, %s2874_s21 }
 0x299   : > { %p2871_p10 = pnand %p2870_p4, %p3056_p9  ;;  %p2877_p1 = scmp.lt.s32.totalorder %s2875_s18, %s2869_s16 }
 0x29b   : > { %p2872_p13 = pneg %p2871_p10  ;;  %p2878_p2 = por %p2877_p1, %p2876_p12 }
 0x29d   : > { %p2879_p5 = pnand %p2878_p2, %p2872_p13 }
 0x32a   : > { %v1491_v0 = vpop.f32.mrf.mxu1 }
 0x32c   : > { %v2616_v53 = vpop.f32.mrf.mxu1 }
 0x32e   : > { %v1639_v54 = vpop.f32.mrf.mxu1 }
 0x330   : > { %v2626_v55 = vpop.f32.mrf.mxu1 }
 0x332   : > { %v1415_v56 = vpop.f32.mrf.mxu0  ;;  %v1785_v57 = vpop.f32.mrf.mxu1 }
 0x333   : > { %v1492_v60 = vadd.f32 %v1491_v0, %v1415_v56 }
 0x334   : > { %v2611_v58 = vpop.f32.mrf.mxu0  ;;  %v2636_v59 = vpop.f32.mrf.mxu1 }
 0x336   : > { %v1565_v61 = vpop.f32.mrf.mxu0  ;;  %v1940_v62 = vpop.f32.mrf.mxu1 }
 0x337   : > { %v1566_v63 = vadd.f32 %v1565_v61, %v1492_v60 }
 0x338   : > { %v2621_v1 = vpop.f32.mrf.mxu0  ;;  %v2646_v2 = vpop.f32.mrf.mxu1 }
 0x339   : > { %v1640_v3 = vadd.f32 %v1639_v54, %v1566_v63 }
 0x33a   : > { %v1713_v4 = vpop.f32.mrf.mxu0  ;;  %v2088_v5 = vpop.f32.mrf.mxu1 }
 0x33b   : > { %v1714_v6 = vadd.f32 %v1713_v4, %v1640_v3 }
 0x33c   : > { %v2631_v7 = vpop.f32.mrf.mxu0  ;;  %v2656_v8 = vpop.f32.mrf.mxu1 }
 0x33d   : > { %v1786_v9 = vadd.f32 %v1785_v57, %v1714_v6 }
 0x33e   : > { %v1864_v10 = vpop.f32.mrf.mxu0  ;;  %v2234_v11 = vpop.f32.mrf.mxu1 }
 0x33f   : > { %2238 = vst.msk [vmem:[%s376_s22] sm:$0xff] %vm400_vm1, %v1786_v9  ;;  %v1941_v14 = vadd.f32 %v1940_v62, %v1864_v10 }
 0x340   : > { %v2641_v12 = vpop.f32.mrf.mxu0  ;;  %v2666_v13 = vpop.f32.mrf.mxu1 }
 0x342   : > { %v2014_v15 = vpop.f32.mrf.mxu0 }
 0x343   : > { %v2015_v16 = vadd.f32 %v2014_v15, %v1941_v14 }
 0x344   : > { %v2651_v17 = vpop.f32.mrf.mxu0 }
 0x345   : > { %v2089_v18 = vadd.f32 %v2088_v5, %v2015_v16 }
 0x346   : > { %v2162_v19 = vpop.f32.mrf.mxu0 }
 0x347   : > { %v2163_v20 = vadd.f32 %v2162_v19, %v2089_v18 }
 0x348   : > { %v2661_v21 = vpop.f32.mrf.mxu0 }
 0x349   : > { %v2235_v22 = vadd.f32 %v2234_v11, %v2163_v20 }
 0x34b   : > { %2239 = vst.msk [vmem:[%s376_s22 + $0x8] sm:$0xff] %vm400_vm1, %v2235_v22 }
 0x34c   : > { %2882 = shalt.err (!%p2879_p5)
}
 0x34d   : > { %s2883_s26 = scalar_lea.hbm %s3307_s12, 256  ;;  %s2887_s25 = scalar_lea.hbm %s3363_s4, 512 }
 0x34e   : > { %p2884_p6 = scmp.ne.s32.totalorder %s3307_s12, %s2883_s26  ;;  %p2888_p0 = scmp.lt.s32.totalorder %s3307_s12, %s3363_s4 }
 0x34f   : > { %p2889_p3 = scmp.lt.s32.totalorder %s2887_s25, %s2883_s26 }
 0x350   : > { %p2885_p7 = pnand %p2884_p6, %p3056_p9 }
 0x351   : > { %p2890_p4 = por %p2889_p3, %p2888_p0 }
 0x352   : > { %p2886_p8 = pneg %p2885_p7 }
 0x354   : > { %p2891_p10 = pnand %p2890_p4, %p2886_p8 }
 0x356   : > { %2894 = shalt.err (!%p2891_p10)
}
 0x357   : > { %2673 = dma.vmem_to_hbm [thread:$0]  (%p3056_p9), %s3309_s8, 256, %s3307_s12, %s2241_s14, %s2968_s9, %s2968_s9, %s2969_s17  }
 0x358 PF: > { %s3387_s27 = sld [smem:[#allocation15_spill]]  ;;  %p3389_p13 = scmp.ge.s32.totalorder %s2957_s23, 2 }
 0x35a   : > { %p2688_p12 = pnand %p3389_p13, %p3063_p11 }
 0x35c   : > { %p2689_p1 = pneg %p2688_p12 }
 0x35e   : > { %s2296_s30 = sand.u32 1, %s3387_s27  }
 0x35f   : > { %s2297_s13 = scalar_lea.sflag [#allocation4], %s2296_s30 }
 0x360   : > { %2928 = dma.done.wait (%p2689_p1), %s2297_s13, 256  }
 0x361   : > { %2930 = vsyncadd (%p2689_p1), %s2297_s13, 4294967040  ;;  %s2306_s22 = scalar_lea.sflag [#allocation10], %s2296_s30 }
 0x362   : > { %2932 = dma.done.wait (%p2689_p1), %s2306_s22, 256  }
 0x363   : > { %2934 = vsyncadd (%p2689_p1), %s2306_s22, 4294967040  ;;  %s28_s23 = sadd.s32 1, %s2957_s23   ;;  %s3390_s6 = sld [smem:[#allocation18_spill]] }
 0x364   : > { %p25_p2 = scmp.ge.s32.totalorder %s28_s23, 4   ;;  %s3391_s21 = sld [smem:[#allocation16_spill]] }
 0x365   : > { %s3392_s22 = sld [smem:[#allocation17_spill]]  ;;  %s3393_s18 = smov %s2941_s19 }
 0x366   : > { %s3394_s19 = smov %s2945_s20  ;;  %27 = sbr.rel (!%p25_p2) target bundleno = 12 (0xc), region = 125 }
 0x369   : > { %s3395_s20 = smov %s3390_s6 }
 0x36b   :  { %2311 = vsyncpa [#allocation3], 1 }
 0x36c   :  { %2313 = vsyncpa [#allocation3 + $0x1], 1 }
 0x36d   :  { %2314 = vsyncpa [#allocation6], 1 }
 0x36e   :  { %2316 = vsyncpa [#allocation6 + $0x1], 1 }
 0x36f   :  { %2317 = vsyncpa [#allocation4], 1 }
 0x370   :  { %2319 = vsyncpa [#allocation4 + $0x1], 1 }
 0x371   :  { %2320 = vsyncpa [#allocation10], 1 }
 0x372   :  { %2322 = vsyncpa [#allocation10 + $0x1], 1 }

</bundles_post_ra>
